<compile_context>
chip_gen: v7x
topology: tpu7x:2x2x1
jax: 0.10.0
libtpu: 0.0.40
codegen_flags: <defaults>
</compile_context>

<pallas_src>
import jax
import jax.numpy as jnp
import numpy as np
from jax.experimental import pallas as pl
from jax.experimental.pallas import tpu as pltpu


def _round_up(x, m):
    return (x + m - 1) // m * m


def _sublane_align(dtype):
    # Native sublane tile: 8 rows for 32-bit, 16 for 16-bit, 32 for 8-bit.
    bits = jnp.dtype(dtype).itemsize * 8
    return max(8, (32 // bits) * 8)


def _vmem_capacity_bytes():
    try:
        return int(pltpu.get_tpu_info().vmem_capacity_bytes)
    except Exception:
        return 64 * 1024 * 1024  # conservative fallback: v7x per-core VMEM


# ----------------------------------------------------------------------------
# Kernel
# ----------------------------------------------------------------------------
def _bias_tanh(acc_f32, bias_row, compute_dtype):
    """Bias add on the f32 MXU accumulator; tanh in the compute dtype.

    In the bf16 path the result feeds a bf16 matmul anyway, and v6e/v7x EUP
    runs bf16 tanh at ~2x the f32 rate.  f32 path stays entirely f32.
    """
    y = acc_f32 + bias_row
    if y.dtype != compute_dtype:
        y = y.astype(compute_dtype)
    return jnp.tanh(y)


def mlp_kernel(xs_ref, xt_ref, w1s_ref, w1t_ref, b_ref, w2_ref, w3_ref, o_ref):
    cdt = w2_ref.dtype  # matmul operand dtype (f32 or bf16)

    # Activations arrive in their original dtype (no wrapper cast / extra HBM
    # round-trip); cast to the matmul operand dtype here on the VPU.
    xs = xs_ref[...].astype(cdt)
    xt = xt_ref[...].astype(cdt)

    # Layer 1: torch.cat([state, time], -1) @ W1 == state @ W1[:S] + time @ W1[S:].
    # TODO(synk): fuse into one K=(S+T) matmul via a small VMEM scratch copy to
    # halve layer-1 MXU weight pushes (modest win, mostly relevant on v5e).
    acc = jnp.dot(xs, w1s_ref[...], preferred_element_type=jnp.float32)
    acc = acc + jnp.dot(xt, w1t_ref[...], preferred_element_type=jnp.float32)
    h = _bias_tanh(acc, b_ref[0:1, :], cdt)

    # Layer 2.
    acc = jnp.dot(h, w2_ref[...], preferred_element_type=jnp.float32)
    h = _bias_tanh(acc, b_ref[1:2, :], cdt)

    # Layer 3.
    acc = jnp.dot(h, w3_ref[...], preferred_element_type=jnp.float32)
    h = _bias_tanh(acc, b_ref[2:3, :], cdt)

    # Store only the logical H columns: 4x less HBM writeback when H << 128 and
    # no post-kernel slice pass (padded hidden columns are exactly zero anyway).
    o_ref[...] = h[:, : o_ref.shape[1]].astype(o_ref.dtype)


# ----------------------------------------------------------------------------
# Wrapper
# ----------------------------------------------------------------------------
def prepare_params(params, state_dim, *, compute_dtype=None):
    """Pad / cast / split the Linear weights once, outside the per-call hot path.

    `params` holds nn.Linear weights stored transposed: w1 (S+T, H), w2/w3
    (H, H), b1/b2/b3 (1, H), so y = x @ W + b (identical math to nn.Linear).
    """
    w1 = params["w1"]
    in_features, H = w1.shape
    S = int(state_dim)
    assert 0 < S < in_features
    cdt = compute_dtype if compute_dtype is not None else w1.dtype
    H_pad = _round_up(max(H, 128), 128)
    pad_cols = ((0, 0), (0, H_pad - H))
    pad_both = ((0, H_pad - H), (0, H_pad - H))
    b = jnp.concatenate(
        [params["b1"].reshape(1, H), params["b2"].reshape(1, H),
         params["b3"].reshape(1, H)], axis=0).astype(jnp.float32)
    return {
        # "concat" fused into layer 1: x_state @ w1s + x_time @ w1t.
        "w1s": jnp.pad(w1[:S], pad_cols).astype(cdt),
        "w1t": jnp.pad(w1[S:], pad_cols).astype(cdt),
        "w2": jnp.pad(params["w2"], pad_both).astype(cdt),
        "w3": jnp.pad(params["w3"], pad_both).astype(cdt),
        "b": b,  # (3, H) f32 fused bias; padded lazily per call (3*H_pad*4 bytes)
    }


def mlp_feature_extractor(current_state, time, params, *, tile_b=1024,
                          compute_dtype=None, out_dtype=None):
    """Pallas equivalent of MLPFeatureExtractor.forward(current_state, time)."""
    B, S = current_state.shape
    Bt, T = time.shape
    assert Bt == B

    if "w1s" not in params:  # raw nn.Linear-style params -> prepare on the fly
        params = prepare_params(params, S, compute_dtype=compute_dtype)
    w1s, w1t, w2, w3 = params["w1s"], params["w1t"], params["w2"], params["w3"]
    H = params["b"].shape[1]
    H_pad = w2.shape[0]
    cdt = w1s.dtype
    assert w1s.shape == (S, H_pad) and w1t.shape == (T, H_pad)
    out_dtype = out_dtype if out_dtype is not None else current_state.dtype

    b = params["b"]
    if H_pad != H:
        b = jnp.pad(b, ((0, 0), (0, H_pad - H)))  # tiny (3, H_pad) f32

    # ---- sizes / VMEM budget ----------------------------------------------
    xs_item = jnp.dtype(current_state.dtype).itemsize
    xt_item = jnp.dtype(time.dtype).itemsize
    o_item = jnp.dtype(out_dtype).itemsize
    w_item = jnp.dtype(cdt).itemsize
    w_bytes = (w1s.size + w1t.size + w2.size + w3.size) * w_item + 3 * H_pad * 4

    # Single-buffer the grid-invariant weights once double-buffering them would
    # cost real VMEM (large num_cells); irrelevant and left at the default for
    # small weights.
    single_buffer_weights = 2 * w_bytes > (4 << 20)
    wbuf = 1 if single_buffer_weights else 2

    vmem_cap = _vmem_capacity_bytes()
    budget = min(100 << 20, (vmem_cap * 3) // 4)  # ~96 MiB v5e/v6e, ~48 MiB v7x

    def vmem_needed(tb):
        io_tiles = 2 * tb * (S * xs_item + T * xt_item + H * o_item)  # 2x-buffered
        live = 4 * tb * H_pad * 4  # f32 accumulator + live intermediates headroom
        return io_tiles + wbuf * w_bytes + live

    # ---- batch tiling -------------------------------------------------------
    align = max(_sublane_align(current_state.dtype), _sublane_align(time.dtype),
                _sublane_align(out_dtype))
    tile_b = max(align, min(_round_up(int(tile_b), align), _round_up(B, align)))
    while tile_b > align and vmem_needed(tile_b) > budget:
        tile_b = max(align, _round_up(tile_b // 2, align))
    grid_b = pl.cdiv(B, tile_b)
    # Prefer an even step count when tiling so v7x's two TensorCores split the
    # batch evenly; single-TC chips (v5e/v6e) just take the largest tile.
    if grid_b > 1 and grid_b % 2 == 1:
        tb2 = max(align, _round_up(pl.cdiv(B, grid_b + 1), align))
        if pl.cdiv(B, tb2) % 2 == 0 and vmem_needed(tb2) <= budget:
            tile_b, grid_b = tb2, pl.cdiv(B, tb2)
    # TODO(synk): on v7x, consider pltpu.CORE_PARALLEL on the batch axis if
    # plain "parallel" does not shard the grid across both TensorCores.

    vmem_limit = int(min(budget, max(2 * vmem_needed(tile_b), 32 << 20)))

    cost = pl.CostEstimate(
        flops=2 * B * (S + T) * H_pad + 4 * B * H_pad * H_pad,
        transcendentals=3 * B * H_pad,
        bytes_accessed=B * (S * xs_item + T * xt_item) + B * H * o_item + w_bytes,
    )

    def wspec(shape):  # grid-invariant weight/bias blocks
        if single_buffer_weights:
            return pl.BlockSpec(shape, lambda i: (0, 0),
                                pipeline_mode=pl.Buffered(1))
        return pl.BlockSpec(shape, lambda i: (0, 0))

    out = pl.pallas_call(
        mlp_kernel,
        out_shape=jax.ShapeDtypeStruct((B, H), out_dtype),
        grid_spec=pltpu.PrefetchScalarGridSpec(
            num_scalar_prefetch=0,
            grid=(grid_b,),
            in_specs=[
                pl.BlockSpec((tile_b, S), lambda i: (i, 0)),  # state rows
                pl.BlockSpec((tile_b, T), lambda i: (i, 0)),  # time rows
                wspec((S, H_pad)),        # w1[:S]
                wspec((T, H_pad)),        # w1[S:]
                wspec((3, H_pad)),        # b1/b2/b3 fused
                wspec((H_pad, H_pad)),    # w2
                wspec((H_pad, H_pad)),    # w3
            ],
            out_specs=pl.BlockSpec((tile_b, H), lambda i: (i, 0)),
        ),
        compiler_params=pltpu.CompilerParams(
            dimension_semantics=("parallel",),
            vmem_limit_bytes=vmem_limit,
        ),
        cost_estimate=cost,
    )(current_state, time, w1s, w1t, b, w2, w3)
    return out


# ----------------------------------------------------------------------------
# Reference + init + self-test
# ----------------------------------------------------------------------------
def init_params(key, in_features, num_cells, dtype=jnp.float32):
    """nn.Linear-style init U(-1/sqrt(fan_in), 1/sqrt(fan_in)); weights stored
    transposed (in, out) so y = x @ W + b (same math as nn.Linear)."""
    ks = jax.random.split(key, 6)

    def lin(kw, kb, fan_in, fan_out):
        bound = 1.0 / float(np.sqrt(fan_in))
        w = jax.random.uniform(kw, (fan_in, fan_out), dtype, -bound, bound)
        b = jax.random.uniform(kb, (1, fan_out), dtype, -bound, bound)
        return w, b

    w1, b1 = lin(ks[0], ks[1], in_features, num_cells)
    w2, b2 = lin(ks[2], ks[3], num_cells, num_cells)
    w3, b3 = lin(ks[4], ks[5], num_cells, num_cells)
    return dict(w1=w1, b1=b1, w2=w2, b2=b2, w3=w3, b3=b3)


def reference(current_state, time, p):
    """float64 NumPy reference: precision-independent ground truth."""
    f64 = lambda a: np.asarray(a, dtype=np.float64)
    x = np.concatenate([f64(current_state), f64(time)], axis=-1)
    h = np.tanh(x @ f64(p["w1"]) + f64(p["b1"]))
    h = np.tanh(h @ f64(p["w2"]) + f64(p["b2"]))
    h = np.tanh(h @ f64(p["w3"]) + f64(p["b3"]))
    return h


if __name__ == "__main__":
    key = jax.random.PRNGKey(0)
    k_state, k_time, k_params, k_state2, k_time2 = jax.random.split(key, 5)

    batch, state_dim, time_dim, num_cells = 8, 24, 8, 32
    in_features = state_dim + time_dim  # torch.cat([state, time], -1)

    current_state = jax.random.normal(k_state, (batch, state_dim), jnp.float32)
    time = jax.random.normal(k_time, (batch, time_dim), jnp.float32)
    params = init_params(k_params, in_features, num_cells)
    ref = reference(current_state, time, params)

    # 1) f32 path, raw params (prepare_params runs inline).
    out = jax.block_until_ready(mlp_feature_extractor(current_state, time, params))
    assert out.shape == (batch, num_cells) and out.dtype == jnp.float32
    assert np.allclose(np.asarray(out, np.float64), ref, atol=2e-4, rtol=2e-4), \
        "f32 path mismatch vs reference"

    # 2) Hoisted (prepared) params + ragged batch + multi-step grid:
    #    B=40 with tile_b=16 -> 3 grid steps, last tile boundary-masked
    #    (no wrapper-side pad and no post-kernel slice).
    prepared = prepare_params(params, state_dim)
    b2 = 40
    cs2 = jax.random.normal(k_state2, (b2, state_dim), jnp.float32)
    t2 = jax.random.normal(k_time2, (b2, time_dim), jnp.float32)
    out2 = jax.block_until_ready(mlp_feature_extractor(cs2, t2, prepared, tile_b=16))
    assert out2.shape == (b2, num_cells)
    assert np.allclose(np.asarray(out2, np.float64), reference(cs2, t2, params),
                       atol=2e-4, rtol=2e-4), "ragged-batch path mismatch"

    # 3) bf16 matmul-operand path (opt-in): bf16 operands + bf16 tanh, f32 MXU
    #    accumulation, f32 output (looser tolerance: operands are rounded).
    out_bf16 = jax.block_until_ready(
        mlp_feature_extractor(current_state, time, params,
                              compute_dtype=jnp.bfloat16))
    assert out_bf16.dtype == jnp.float32
    assert np.allclose(np.asarray(out_bf16, np.float64), ref,
                       atol=5e-2, rtol=5e-2), "bf16 path mismatch"

    print("KERNEL_OK")
</pallas_src>

<mosaic_0001>
module attributes {stable_mosaic.version = 11 : i64} {
  func.func @mlp_kernel(%arg0: i32, %arg1: memref<8x24xf32, #tpu.memory_space<vmem>>, %arg2: memref<8x8xf32, #tpu.memory_space<vmem>>, %arg3: memref<24x128xf32, #tpu.memory_space<vmem>>, %arg4: memref<8x128xf32, #tpu.memory_space<vmem>>, %arg5: memref<3x128xf32, #tpu.memory_space<vmem>>, %arg6: memref<128x128xf32, #tpu.memory_space<vmem>>, %arg7: memref<128x128xf32, #tpu.memory_space<vmem>>, %arg8: memref<8x32xf32, #tpu.memory_space<vmem>>) attributes {dimension_semantics = [#tpu.dimension_semantics<parallel>], iteration_bounds = array<i64: 1>, scalar_prefetch = 0 : i64, scratch_operands = 0 : i64, tpu.core_type = #tpu.core_type<tc>, window_params = [{transform_indices = @transform_0, window_bounds = array<i64: 8, 24>}, {transform_indices = @transform_1, window_bounds = array<i64: 8, 8>}, {pipeline_mode = #tpu.pipeline_mode<synchronous>, transform_indices = @transform_2, window_bounds = array<i64: 24, 128>}, {pipeline_mode = #tpu.pipeline_mode<synchronous>, transform_indices = @transform_3, window_bounds = array<i64: 8, 128>}, {pipeline_mode = #tpu.pipeline_mode<synchronous>, transform_indices = @transform_4, window_bounds = array<i64: 3, 128>}, {pipeline_mode = #tpu.pipeline_mode<synchronous>, transform_indices = @transform_5, window_bounds = array<i64: 128, 128>}, {pipeline_mode = #tpu.pipeline_mode<synchronous>, transform_indices = @transform_6, window_bounds = array<i64: 128, 128>}, {transform_indices = @transform_7, window_bounds = array<i64: 8, 32>}]} {
    %c0 = arith.constant 0 : index
    %c0_0 = arith.constant 0 : index
    %0 = vector.load %arg1[%c0, %c0_0] : memref<8x24xf32, #tpu.memory_space<vmem>>, vector<8x24xf32>
    %c0_1 = arith.constant 0 : index
    %c0_2 = arith.constant 0 : index
    %1 = vector.load %arg2[%c0_1, %c0_2] : memref<8x8xf32, #tpu.memory_space<vmem>>, vector<8x8xf32>
    %c0_3 = arith.constant 0 : index
    %c0_4 = arith.constant 0 : index
    %2 = vector.load %arg3[%c0_3, %c0_4] : memref<24x128xf32, #tpu.memory_space<vmem>>, vector<24x128xf32>
    %cst = arith.constant dense<0.000000e+00> : vector<8x128xf32>
    %3 = tpu.matmul %0, %2, %cst {dimension_numbers = #tpu.dot_dimension_numbers<[1], [0], [0], [1], [0, 0, 1, 1], [], []>} : vector<8x24xf32>, vector<24x128xf32>, vector<8x128xf32> -> vector<8x128xf32>
    %c0_5 = arith.constant 0 : index
    %c0_6 = arith.constant 0 : index
    %4 = vector.load %arg4[%c0_5, %c0_6] : memref<8x128xf32, #tpu.memory_space<vmem>>, vector<8x128xf32>
    %cst_7 = arith.constant dense<0.000000e+00> : vector<8x128xf32>
    %5 = tpu.matmul %1, %4, %cst_7 {dimension_numbers = #tpu.dot_dimension_numbers<[1], [0], [0], [1], [0, 0, 1, 1], [], []>} : vector<8x8xf32>, vector<8x128xf32>, vector<8x128xf32> -> vector<8x128xf32>
    %6 = arith.addf %3, %5 : vector<8x128xf32>
    %c0_8 = arith.constant 0 : index
    %c0_9 = arith.constant 0 : index
    %7 = vector.load %arg5[%c0_8, %c0_9] : memref<3x128xf32, #tpu.memory_space<vmem>>, vector<1x128xf32>
    %8 = vector.broadcast %7 : vector<1x128xf32> to vector<8x128xf32>
    %9 = arith.addf %6, %8 : vector<8x128xf32>
    %10 = math.tanh %9 : vector<8x128xf32>
    %c0_10 = arith.constant 0 : index
    %c0_11 = arith.constant 0 : index
    %11 = vector.load %arg6[%c0_10, %c0_11] : memref<128x128xf32, #tpu.memory_space<vmem>>, vector<128x128xf32>
    %cst_12 = arith.constant dense<0.000000e+00> : vector<8x128xf32>
    %12 = tpu.matmul %10, %11, %cst_12 {dimension_numbers = #tpu.dot_dimension_numbers<[1], [0], [0], [1], [0, 0, 1, 1], [], []>} : vector<8x128xf32>, vector<128x128xf32>, vector<8x128xf32> -> vector<8x128xf32>
    %c1 = arith.constant 1 : index
    %c0_13 = arith.constant 0 : index
    %13 = vector.load %arg5[%c1, %c0_13] : memref<3x128xf32, #tpu.memory_space<vmem>>, vector<1x128xf32>
    %14 = vector.broadcast %13 : vector<1x128xf32> to vector<8x128xf32>
    %15 = arith.addf %12, %14 : vector<8x128xf32>
    %16 = math.tanh %15 : vector<8x128xf32>
    %c0_14 = arith.constant 0 : index
    %c0_15 = arith.constant 0 : index
    %17 = vector.load %arg7[%c0_14, %c0_15] : memref<128x128xf32, #tpu.memory_space<vmem>>, vector<128x128xf32>
    %cst_16 = arith.constant dense<0.000000e+00> : vector<8x128xf32>
    %18 = tpu.matmul %16, %17, %cst_16 {dimension_numbers = #tpu.dot_dimension_numbers<[1], [0], [0], [1], [0, 0, 1, 1], [], []>} : vector<8x128xf32>, vector<128x128xf32>, vector<8x128xf32> -> vector<8x128xf32>
    %c2 = arith.constant 2 : index
    %c0_17 = arith.constant 0 : index
    %19 = vector.load %arg5[%c2, %c0_17] : memref<3x128xf32, #tpu.memory_space<vmem>>, vector<1x128xf32>
    %20 = vector.broadcast %19 : vector<1x128xf32> to vector<8x128xf32>
    %21 = arith.addf %18, %20 : vector<8x128xf32>
    %22 = math.tanh %21 : vector<8x128xf32>
    %23 = vector.extract_strided_slice %22 {offsets = [0, 0], sizes = [8, 32], strides = [1, 1]} : vector<8x128xf32> to vector<8x32xf32>
    %c0_18 = arith.constant 0 : index
    %c0_19 = arith.constant 0 : index
    %24 = vector.load %arg8[%c0_18, %c0_19] : memref<8x32xf32, #tpu.memory_space<vmem>>, vector<8x32xf32>
    tpu.vector_store %arg8[%c0_18, %c0_19], %23 {strides = array<i32>} : memref<8x32xf32, #tpu.memory_space<vmem>>, vector<8x32xf32>,
    return
  }
  func.func @transform_0(%arg0: i32) -> (i32, i32) {
    %c0_i32 = arith.constant 0 : i32
    %c0_i32_0 = arith.constant 0 : i32
    return %arg0, %c0_i32 : i32, i32
  }
  func.func @transform_1(%arg0: i32) -> (i32, i32) {
    %c0_i32 = arith.constant 0 : i32
    %c0_i32_0 = arith.constant 0 : i32
    return %arg0, %c0_i32 : i32, i32
  }
  func.func @transform_2(%arg0: i32) -> (i32, i32) {
    %c0_i32 = arith.constant 0 : i32
    %c0_i32_0 = arith.constant 0 : i32
    %c0_i32_1 = arith.constant 0 : i32
    return %c0_i32, %c0_i32_0 : i32, i32
  }
  func.func @transform_3(%arg0: i32) -> (i32, i32) {
    %c0_i32 = arith.constant 0 : i32
    %c0_i32_0 = arith.constant 0 : i32
    %c0_i32_1 = arith.constant 0 : i32
    return %c0_i32, %c0_i32_0 : i32, i32
  }
  func.func @transform_4(%arg0: i32) -> (i32, i32) {
    %c0_i32 = arith.constant 0 : i32
    %c0_i32_0 = arith.constant 0 : i32
    %c0_i32_1 = arith.constant 0 : i32
    return %c0_i32, %c0_i32_0 : i32, i32
  }
  func.func @transform_5(%arg0: i32) -> (i32, i32) {
    %c0_i32 = arith.constant 0 : i32
    %c0_i32_0 = arith.constant 0 : i32
    %c0_i32_1 = arith.constant 0 : i32
    return %c0_i32, %c0_i32_0 : i32, i32
  }
  func.func @transform_6(%arg0: i32) -> (i32, i32) {
    %c0_i32 = arith.constant 0 : i32
    %c0_i32_0 = arith.constant 0 : i32
    %c0_i32_1 = arith.constant 0 : i32
    return %c0_i32, %c0_i32_0 : i32, i32
  }
  func.func @transform_7(%arg0: i32) -> (i32, i32) {
    %c0_i32 = arith.constant 0 : i32
    %c0_i32_0 = arith.constant 0 : i32
    return %arg0, %c0_i32 : i32, i32
  }
}

</mosaic_0001>

<bundles_post_ra>
// kernel: tpu_custom_call.1
= control target key start
LH: loop header
LB: loop body
LE: loop exit
PB: predicated region body
PF: predicated region fallthrough
CT: control target
= control target key end

     0   :  { %12 = vsyncpa [#allocation3], 0  ;;  %s957_s0 = inlined_call_operand.hbm [shape: f32[8,24], index: 0, kind: input, shape index: {}]   ;;  %s958_s1 = inlined_call_operand.hbm [shape: f32[8,8], index: 1, kind: input, shape index: {}]   ;;  %s959_s2 = inlined_call_operand.hbm [shape: f32[24,128], index: 2, kind: input, shape index: {}]   ;;  %s960_s3 = inlined_call_operand.vmem [shape: f32[8,128], index: 3, kind: input, shape index: {}]   ;;  %s961_s4 = inlined_call_operand.vmem [shape: f32[3,128], index: 4, kind: input, shape index: {}]   ;;  %s962_s5 = inlined_call_operand.hbm [shape: f32[128,128], index: 5, kind: input, shape index: {}]   ;;  %s963_s6 = inlined_call_operand.hbm [shape: f32[128,128], index: 6, kind: input, shape index: {}]   ;;  %s964_s7 = inlined_call_operand.hbm [shape: f32[8,32], index: 7, kind: output, shape index: {}]  }
   0x1   :  { %13 = vsyncpa [#allocation6], 0 }
   0x2   :  { %14 = vsyncpa [#allocation9], 0 }
   0x3   :  { %15 = vsyncpa [#allocation4], 0  ;;  %s792_s24 = smov [#allocation5]   ;;  %s652_s28 = scalar_lea.hbm %s958_s1, 128 }
   0x4   :  { %s32_s25 = sshll.u32 %s792_s24, 4  ;;  %p653_p0 = scmp.ne.s32.totalorder %s958_s1, %s652_s28  ;;  %s33_s25 = int_to_ptr.vmem [resolvable:$true] %s32_s25 }
   0x5   :  { %p656_p1 = scmp.lt.u32.totalorder %s652_s28, %s958_s1 }
   0x7   :  { %p658_p2 = pnand %p656_p1, %p653_p0 }
   0x9   :  { %661 = shalt.err (!%p658_p2)
}
   0xa   :  { %s662_s10 = scalar_lea.vmem %s33_s25, 128  ;;  %p667_p4 = scmp.lt.s32.totalorder %s33_s25, %s33_s25 }
   0xb   :  { %p663_p3 = scmp.ne.s32.totalorder %s33_s25, %s662_s10  ;;  %p668_p5 = scmp.lt.s32.totalorder %s662_s10, %s662_s10 }
   0xd   :  { %p669_p6 = por %p668_p5, %p667_p4 }
   0xf   :  { %p670_p7 = pnand %p669_p6, %p663_p3 }
  0x11   :  { %673 = shalt.err (!%p670_p7)
}
  0x12   :  { %35 = dma.hbm_to_vmem [thread:$0]  %s958_s1, 128, %s33_s25, [#allocation6]  }
  0x13   :  { %s793_s13 = smov [#allocation8]   ;;  %s794_s15 = smov [#allocation2]  }
  0x14   :  { %s57_s14 = sshll.u32 %s793_s13, 4  ;;  %s22_s16 = sshll.u32 %s794_s15, 4  ;;  %s58_s14 = int_to_ptr.vmem [resolvable:$true] %s57_s14  ;;  %s23_s16 = int_to_ptr.vmem [resolvable:$true] %s22_s16 }
  0x15   :  { %s674_s19 = scalar_lea.hbm %s962_s5, 2048 }
  0x16   :  { %p675_p8 = scmp.ne.s32.totalorder %s962_s5, %s674_s19  ;;  %p678_p9 = scmp.lt.u32.totalorder %s674_s19, %s962_s5 }
  0x18   :  { %p680_p10 = pnand %p678_p9, %p675_p8 }
  0x1a   :  { %683 = shalt.err (!%p680_p10)
}
  0x1b   :  { %s684_s1 = scalar_lea.vmem %s58_s14, 2048  ;;  %p689_p12 = scmp.lt.s32.totalorder %s58_s14, %s58_s14 }
  0x1c   :  { %p685_p11 = scmp.ne.s32.totalorder %s58_s14, %s684_s1  ;;  %p690_p13 = scmp.lt.s32.totalorder %s684_s1, %s684_s1 }
  0x1e   :  { %p691_p0 = por %p690_p13, %p689_p12 }
  0x20   :  { %p692_p1 = pnand %p691_p0, %p685_p11 }
  0x22   :  { %695 = shalt.err (!%p692_p1)
}
  0x23   :  { %s795_s24 = smov 128   ;;  %s796_s25 = smov 8  }
  0x24   :  { %63 = dma.hbm_to_vmem [thread:$0]  %s962_s5, 2048, %s58_s14, [#allocation9], %s795_s24, %s795_s24, %s796_s25  }
  0x25   :  { %s696_s30 = scalar_lea.hbm %s957_s0, 128 }
  0x26   :  { %p697_p2 = scmp.ne.s32.totalorder %s957_s0, %s696_s30  ;;  %p700_p3 = scmp.lt.u32.totalorder %s696_s30, %s957_s0 }
  0x28   :  { %p702_p4 = pnand %p700_p3, %p697_p2 }
  0x2a   :  { %705 = shalt.err (!%p702_p4)
}
  0x2b   :  { %s706_s12 = scalar_lea.vmem %s23_s16, 128  ;;  %p711_p6 = scmp.lt.s32.totalorder %s23_s16, %s23_s16 }
  0x2c   :  { %p707_p5 = scmp.ne.s32.totalorder %s23_s16, %s706_s12  ;;  %p712_p7 = scmp.lt.s32.totalorder %s706_s12, %s706_s12 }
  0x2e   :  { %p713_p8 = por %p712_p7, %p711_p6 }
  0x30   :  { %p714_p9 = pnand %p713_p8, %p707_p5 }
  0x32   :  { %717 = shalt.err (!%p714_p9)
}
  0x33   :  { %25 = dma.hbm_to_vmem [thread:$0]  %s957_s0, 128, %s23_s16, [#allocation3]  }
  0x34   :  { %s797_s14 = smov [#allocation7]   ;;  %s798_s17 = smov [#allocation10]  }
  0x35   :  { %s41_s15 = sshll.u32 %s797_s14, 4  ;;  %s69_s18 = sshll.u32 %s798_s17, 4  ;;  %s42_s15 = int_to_ptr.vmem [resolvable:$true] %s41_s15  ;;  %s70_s18 = int_to_ptr.vmem [resolvable:$true] %s69_s18 }
  0x36   :  { %s718_s21 = scalar_lea.hbm %s959_s2, 384 }
  0x37   :  { %p719_p10 = scmp.ne.s32.totalorder %s959_s2, %s718_s21  ;;  %p722_p11 = scmp.lt.u32.totalorder %s718_s21, %s959_s2 }
  0x39   :  { %p724_p12 = pnand %p722_p11, %p719_p10 }
  0x3b   :  { %727 = shalt.err (!%p724_p12)
}
  0x3c   :  { %s728_s0 = scalar_lea.vmem %s42_s15, 384  ;;  %p733_p0 = scmp.lt.s32.totalorder %s42_s15, %s42_s15 }
  0x3d   :  { %p729_p13 = scmp.ne.s32.totalorder %s42_s15, %s728_s0  ;;  %p734_p1 = scmp.lt.s32.totalorder %s728_s0, %s728_s0 }
  0x3f   :  { %p735_p2 = por %p734_p1, %p733_p0 }
  0x41   :  { %p736_p3 = pnand %p735_p2, %p729_p13 }
  0x43   :  { %739 = shalt.err (!%p736_p3)
}
  0x44   :  { %47 = dma.hbm_to_vmem [thread:$0]  %s959_s2, 384, %s42_s15, [#allocation6], %s795_s24, %s795_s24, %s796_s25  }
  0x45   :  { %s740_s30 = scalar_lea.hbm %s963_s6, 2048 }
  0x46   :  { %p741_p4 = scmp.ne.s32.totalorder %s963_s6, %s740_s30  ;;  %p744_p5 = scmp.lt.u32.totalorder %s740_s30, %s963_s6 }
  0x48   :  { %p746_p6 = pnand %p744_p5, %p741_p4 }
  0x4a   :  { %749 = shalt.err (!%p746_p6)
}
  0x4b   :  { %s750_s12 = scalar_lea.vmem %s70_s18, 2048  ;;  %p755_p8 = scmp.lt.s32.totalorder %s70_s18, %s70_s18 }
  0x4c   :  { %p751_p7 = scmp.ne.s32.totalorder %s70_s18, %s750_s12  ;;  %p756_p9 = scmp.lt.s32.totalorder %s750_s12, %s750_s12 }
  0x4e   :  { %p757_p10 = por %p756_p9, %p755_p8 }
  0x50   :  { %p758_p11 = pnand %p757_p10, %p751_p7 }
  0x52   :  { %761 = shalt.err (!%p758_p11)
}
  0x53   :  { %75 = dma.hbm_to_vmem [thread:$0]  %s963_s6, 2048, %s70_s18, [#allocation9], %s795_s24, %s795_s24, %s796_s25  }
  0x54   :  { %784 = dma.done.wait [#allocation3], 128  }
  0x55   :  { %785 = vsyncadd [#allocation3], 4294967168 }
  0x56   :  { %786 = dma.done.wait [#allocation6], 512  }
  0x57   :  { %787 = vsyncadd [#allocation6], 4294966784 }
  0x58   :  { %788 = dma.done.wait [#allocation9], 4096  }
  0x59   :  { %789 = vsyncadd [#allocation9], 4294963200  ;;  %v799_v0 = vmov 0.0|0.0   ;;  %v800_v1 = vmov 0.0   ;;  %vm801_vm0 = vmmov 0   ;;  %vm97_vm1 = vcmask 64512  }
  0x5a   :  { %584 = vmatprep.subr.bf16.mxu1 %v799_v0  ;;  %500 = vmatprep.subr.mxu0 %v800_v1  ;;  %v93_v2 = vld [vmem:[#allocation7] sm:$0xff]  ;;  %v94_v3 = vld [vmem:[#allocation7 + $0x8] sm:$0xff]  ;;  %v96_v4 = vld [vmem:[%s960_s3] sm:$0xff]  ;;  %vm171_vm2 = vcmask 195584   ;;  %s802_s18 = smov [#allocation11]   ;;  %vm436_vm3 = vcmask 261120  }
  0x5b   :  { %502 = vmatprep.mubr.msk.f32.mxu0 %vm801_vm0, %v800_v1  ;;  %511 = vmatprep.mubr.msk.f32.mxu1 %vm801_vm0, %v800_v1  ;;  %v585_v5 = vpack.c.bf16 %v94_v3, %v93_v2  ;;  %v92_v6 = vld [vmem:[#allocation5] sm:$0xff]  ;;  %v253_v8 = vld [vmem:[#allocation8 + $0x8] sm:$0xff]  ;;  %v254_v9 = vld [vmem:[#allocation8 + $0x10] sm:$0xff]  ;;  %s444_s19 = sshll.u32 %s802_s18, 4  ;;  %s445_s19 = int_to_ptr.vmem [resolvable:$true] %s444_s19 }
  0x5c   :  { %501 = vmatpush3.msra.mxu0 %v96_v4  ;;  %v252_v7 = vld [vmem:[#allocation8] sm:$0xff]  ;;  %v255_v11 = vld [vmem:[#allocation8 + $0x18] sm:$0xff]  ;;  %v257_v16 = vld [vmem:[#allocation8 + $0x28] sm:$0xff]  ;;  %s762_s20 = scalar_lea.vmem %s445_s19, 128  ;;  %p767_p13 = scmp.lt.s32.totalorder %s445_s19, %s445_s19 }
  0x5d   :  { %503 = vmatmul.mubr.msk.f32.vlgmr.msra.gmra.mrb[0].mxu0 %vm97_vm1, %v92_v6  ;;  %587 = vmatprep.subr.bf16.mxu0 %v799_v0  ;;  %v588_v10 = vpack.c.bf16 %v253_v8, %v252_v7  ;;  %v95_v12 = vld [vmem:[#allocation7 + $0x10] sm:$0xff]  ;;  %v591_v14 = vpack.c.bf16 %v255_v11, %v254_v9  ;;  %v256_v15 = vld [vmem:[#allocation8 + $0x20] sm:$0xff]  ;;  %v258_v18 = vld [vmem:[#allocation8 + $0x30] sm:$0xff]  ;;  %p763_p12 = scmp.ne.s32.totalorder %s445_s19, %s762_s20  ;;  %p768_p0 = scmp.lt.s32.totalorder %s762_s20, %s762_s20 }
  0x5e   :  { %586 = vmatpush3.bf16.msra.mxu1 %v585_v5  ;;  %546 = vmatprep.mubr.msk.f32.mxu0 %vm801_vm0, %v800_v1  ;;  %v91_v13 = vld [vmem:[#allocation2] sm:$0xff]  ;;  %v594_v17 = vpack.c.bf16 %v257_v16, %v256_v15  ;;  %v260_v21 = vld [vmem:[#allocation8 + $0x40] sm:$0xff]  ;;  %v261_v22 = vld [vmem:[#allocation8 + $0x48] sm:$0xff] }
  0x5f   :  { %509 = vmatprep.subr.mxu1 %v800_v1  ;;  %589 = vmatpush3.bf16.msra.mxu0 %v588_v10  ;;  %v259_v19 = vld [vmem:[#allocation8 + $0x38] sm:$0xff]  ;;  %v600_v23 = vpack.c.bf16 %v261_v22, %v260_v21  ;;  %v262_v24 = vld [vmem:[#allocation8 + $0x50] sm:$0xff]  ;;  %v264_v27 = vld [vmem:[#allocation8 + $0x60] sm:$0xff]  ;;  %p769_p1 = por %p768_p0, %p767_p13 }
  0x60   :  { %590 = vmatprep.subr.bf16.mxu0 %v799_v0  ;;  %v597_v20 = vpack.c.bf16 %v259_v19, %v258_v18  ;;  %v263_v25 = vld [vmem:[#allocation8 + $0x58] sm:$0xff]  ;;  %v265_v28 = vld [vmem:[#allocation8 + $0x68] sm:$0xff]  ;;  %v266_v30 = vld [vmem:[#allocation8 + $0x70] sm:$0xff] }
  0x61   :  { %v603_v26 = vpack.c.bf16 %v263_v25, %v262_v24  ;;  %v606_v29 = vpack.c.bf16 %v265_v28, %v264_v27  ;;  %v267_v31 = vld [vmem:[#allocation8 + $0x78] sm:$0xff]  ;;  %v344_v33 = vld [vmem:[#allocation10] sm:$0xff]  ;;  %v345_v34 = vld [vmem:[#allocation10 + $0x8] sm:$0xff]  ;;  %p770_p2 = pnand %p769_p1, %p763_p12 }
  0x62   :  { %510 = vmatpush3.msra.mxu1 %v95_v12  ;;  %v609_v32 = vpack.c.bf16 %v267_v31, %v266_v30  ;;  %v346_v35 = vld [vmem:[#allocation10 + $0x10] sm:$0xff]  ;;  %v612_v36 = vpack.c.bf16 %v345_v34, %v344_v33  ;;  %v347_v37 = vld [vmem:[#allocation10 + $0x18] sm:$0xff]  ;;  %v348_v39 = vld [vmem:[#allocation10 + $0x20] sm:$0xff] }
  0x63   :  { %512 = vmatmul.mubr.msk.f32.vlgmr.msra.gmra.mrb[0].mxu1 %vm171_vm2, %v91_v13  ;;  %611 = vmatprep.subr.bf16.mxu1 %v799_v0  ;;  %v615_v38 = vpack.c.bf16 %v347_v37, %v346_v35  ;;  %v349_v40 = vld [vmem:[#allocation10 + $0x28] sm:$0xff]  ;;  %v350_v42 = vld [vmem:[#allocation10 + $0x30] sm:$0xff]  ;;  %v351_v43 = vld [vmem:[#allocation10 + $0x38] sm:$0xff] }
  0x64   :  { %592 = vmatpush3.bf16.msra.mxu0 %v591_v14  ;;  %581 = vmatprep.mubr.msk.f32.mxu1 %vm801_vm0, %v800_v1  ;;  %v618_v41 = vpack.c.bf16 %v349_v40, %v348_v39  ;;  %v621_v44 = vpack.c.bf16 %v351_v43, %v350_v42  ;;  %v352_v45 = vld [vmem:[#allocation10 + $0x40] sm:$0xff]  ;;  %v353_v46 = vld [vmem:[#allocation10 + $0x48] sm:$0xff]  ;;  %v457_v51 = vld [vmem:[%s961_s4] ss:$0 sm:$0xff] }
  0x65   :  { %593 = vmatprep.subr.bf16.mxu0 %v799_v0  ;;  %613 = vmatpush3.bf16.msra.mxu1 %v612_v36  ;;  %v624_v47 = vpack.c.bf16 %v353_v46, %v352_v45  ;;  %v354_v56 = vld [vmem:[#allocation10 + $0x50] sm:$0xff]  ;;  %v355_v57 = vld [vmem:[#allocation10 + $0x58] sm:$0xff]  ;;  %v356_v59 = vld [vmem:[#allocation10 + $0x60] sm:$0xff] }
  0x66   :  { %614 = vmatprep.subr.bf16.mxu1 %v799_v0  ;;  %v627_v58 = vpack.c.bf16 %v355_v57, %v354_v56  ;;  %v357_v60 = vld [vmem:[#allocation10 + $0x68] sm:$0xff]  ;;  %v358_v62 = vld [vmem:[#allocation10 + $0x70] sm:$0xff]  ;;  %v359_v63 = vld [vmem:[#allocation10 + $0x78] sm:$0xff] }
  0x67   :  { %v630_v61 = vpack.c.bf16 %v357_v60, %v356_v59  ;;  %v633_v1 = vpack.c.bf16 %v359_v63, %v358_v62  ;;  %v458_v2 = vld [vmem:[%s961_s4 + $0x1] ss:$0 sm:$0xff]  ;;  %v459_v7 = vld [vmem:[%s961_s4 + $0x2] ss:$0 sm:$0xff] }
  0x68   :  { %595 = vmatpush3.bf16.msra.mxu0 %v594_v17 }
  0x69   :  { %596 = vmatprep.subr.bf16.mxu0 %v799_v0  ;;  %616 = vmatpush3.bf16.msra.mxu1 %v615_v38 }
  0x6a   :  { %617 = vmatprep.subr.bf16.mxu1 %v799_v0 }
  0x6c   :  { %598 = vmatpush3.bf16.msra.mxu0 %v597_v20 }
  0x6d   :  { %599 = vmatprep.subr.bf16.mxu0 %v799_v0  ;;  %619 = vmatpush3.bf16.msra.mxu1 %v618_v41 }
  0x6e   :  { %620 = vmatprep.subr.bf16.mxu1 %v799_v0 }
  0x70   :  { %601 = vmatpush3.bf16.msra.mxu0 %v600_v23 }
  0x71   :  { %602 = vmatprep.subr.bf16.mxu0 %v799_v0  ;;  %622 = vmatpush3.bf16.msra.mxu1 %v621_v44 }
  0x72   :  { %623 = vmatprep.subr.bf16.mxu1 %v799_v0 }
  0x74   :  { %604 = vmatpush3.bf16.msra.mxu0 %v603_v26 }
  0x75   :  { %605 = vmatprep.subr.bf16.mxu0 %v799_v0  ;;  %625 = vmatpush3.bf16.msra.mxu1 %v624_v47 }
  0x76   :  { %626 = vmatprep.subr.bf16.mxu1 %v799_v0 }
  0x78   :  { %607 = vmatpush3.bf16.msra.mxu0 %v606_v29 }
  0x79   :  { %608 = vmatprep.subr.bf16.mxu0 %v799_v0  ;;  %628 = vmatpush3.bf16.msra.mxu1 %v627_v58 }
  0x7a   :  { %629 = vmatprep.subr.bf16.mxu1 %v799_v0 }
  0x7c   :  { %610 = vmatpush3.bf16.msra.mxu0 %v609_v32 }
  0x7d   :  { %631 = vmatpush3.bf16.msra.mxu1 %v630_v61 }
  0x7e   :  { %632 = vmatprep.subr.bf16.mxu1 %v799_v0 }
  0x81   :  { %634 = vmatpush3.bf16.msra.mxu1 %v633_v1 }
 0x130   :  { %v167_v48 = vpop.f32.mrb[0].mxu0 }
 0x131   :  { %v504_v49 = vpop.f32.mrb[1].mxu0 }
 0x136   :  { %v241_v50 = vpop.f32.mrb[0].mxu1 }
 0x137   :  { %v242_v52 = vadd.f32 %v241_v50, %v167_v48  ;;  %v513_v53 = vpop.f32.mrb[1].mxu1 }
 0x139   :  { %v250_v54 = vadd.f32 %v457_v51, %v242_v52 }
 0x13b   :  { %646 = vtanh.f32 %v250_v54 }
 0x145   :  { %v647_v55 = vpop.eup %646 }
 0x146   :  { %547 = vmatmul.mubr.f32.vlgmr.msra.gmra.mrb[2].mxu0 %v647_v55 }
 0x219   :  { %v339_v3 = vpop.f32.mrb[2].mxu0 }
 0x21a   :  { %v340_v4 = vadd.f32 %v458_v2, %v339_v3  ;;  %v548_v5 = vpop.f32.mrb[3].mxu0 }
 0x21c   :  { %648 = vtanh.f32 %v340_v4 }
 0x226   :  { %v649_v6 = vpop.eup %648 }
 0x227   :  { %582 = vmatmul.mubr.f32.vlgmr.msra.gmra.mrb[2].mxu1 %v649_v6 }
 0x2fa   :  { %v431_v8 = vpop.f32.mrb[2].mxu1 }
 0x2fb   :  { %v432_v9 = vadd.f32 %v459_v7, %v431_v8  ;;  %v583_v10 = vpop.f32.mrb[3].mxu1 }
 0x2fd   :  { %650 = vtanh.f32 %v432_v9 }
 0x307   :  { %v651_v0 = vpop.eup %650 }
 0x308   :  { %437 = vst.msk [vmem:[#allocation11] sm:$0xff] %vm436_vm3, %v651_v0 }
 0x309   :  { %773 = shalt.err (!%p770_p2)
}
 0x30a   :  { %s774_s4 = scalar_lea.hbm %s964_s7, 128 }
 0x30b   :  { %p775_p3 = scmp.ne.s32.totalorder %s964_s7, %s774_s4  ;;  %p778_p4 = scmp.lt.u32.totalorder %s774_s4, %s964_s7 }
 0x30d   :  { %p780_p5 = pnand %p778_p4, %p775_p3 }
 0x30f   :  { %783 = shalt.err (!%p780_p5)
}
 0x310   :  { %447 = dma.vmem_to_hbm [thread:$0]  %s445_s19, 128, %s964_s7, [#allocation4]  }
 0x311   :  { %790 = dma.done.wait [#allocation4], 128  }
 0x312   :  { %791 = vsyncadd [#allocation4], 4294967168 }
 0x313   :  { %451 = vsyncpa [#allocation3], 1 }
 0x314   :  { %452 = vsyncpa [#allocation6], 1 }
 0x315   :  { %453 = vsyncpa [#allocation9], 1 }
 0x316   :  { %454 = vsyncpa [#allocation4], 1 }

</bundles_post_ra>
